<compile_context>
chip_gen: v5e
topology: v5e:2x2
jax: 0.10.0
libtpu: 0.0.40
codegen_flags: <defaults>
</compile_context>

<pallas_src>
import jax
import jax.numpy as jnp
from jax.experimental import pallas as pl
from jax.experimental.pallas import tpu as pltpu


_VMEM_STEP_BUDGET = 24 * 1024 * 1024   # per-grid-step footprint target (v7x-safe)
_VMEM_LIMIT_BYTES = 48 * 1024 * 1024   # explicit scoped-VMEM limit (< v7x 64 MiB)
_LANE = 128


# ---------------------------------------------------------------------------
# Pallas kernel: concatenate N [TB, N_i] VMEM tiles along the last (lane) dim.
# ---------------------------------------------------------------------------
def _concat_last_dim_kernel(*refs):
    out_ref = refs[-1]
    in_refs = refs[:-1]
    off = 0
    for r in in_refs:
        n = r.shape[-1]
        out_ref[:, off:off + n] = r[...]      # static column slice of the tile
        off += n


def _choose_batch_tile(B, total_cols, itemsize):
    """Largest sublane-quantum multiple whose per-step footprint fits budget."""
    sublane = {4: 8, 2: 16, 1: 32}.get(int(itemsize), 8)
    # Per grid step: double-buffered inputs (sum_i N_i == total) + output (total).
    bytes_per_row = 2 * (total_cols + total_cols) * int(itemsize)
    max_rows = max(sublane, _VMEM_STEP_BUDGET // max(bytes_per_row, 1))
    tb = min(B, max_rows, 1024)     # >1024 rows buys nothing for a mem-bound copy
    if tb < B:
        tb = max(sublane, (tb // sublane) * sublane)
    return int(tb)


def pallas_concat_last_dim(parts, batch_tile=None):
    """Concatenate a list of [B, N_i] arrays into [B, sum N_i] via Pallas."""
    parts = list(parts)
    dtype = parts[0].dtype
    B = int(parts[0].shape[0])
    for p in parts:
        if p.dtype != dtype:
            raise ValueError(f"all leaves must share a dtype, got {p.dtype} vs {dtype}")
        if int(p.shape[0]) != B:
            raise ValueError(f"all leaves must share batch dim {B}, got {p.shape}")

    widths = [int(p.shape[-1]) for p in parts]
    total = sum(widths)
    itemsize = dtype.itemsize

    tb = int(batch_tile) if batch_tile is not None else _choose_batch_tile(B, total, itemsize)
    tb = max(1, min(tb, B))

    grid = (pl.cdiv(B, tb),)
    in_specs = [pl.BlockSpec((tb, w), lambda i: (i, 0)) for w in widths]
    out_spec = pl.BlockSpec((tb, total), lambda i: (i, 0))

    return pl.pallas_call(
        _concat_last_dim_kernel,
        out_shape=jax.ShapeDtypeStruct((B, total), dtype),
        grid=grid,
        in_specs=in_specs,
        out_specs=out_spec,
        compiler_params=pltpu.CompilerParams(
            dimension_semantics=("parallel",),      # megacore split on v7x
            vmem_limit_bytes=_VMEM_LIMIT_BYTES,
        ),
    )(*parts)


# ---------------------------------------------------------------------------
# FlattenModule semantics (matches the PyTorch reference exactly).
# ---------------------------------------------------------------------------
def _flatten_leaf(obs, instruction):
    if instruction == 'same':
        return obs
    assert instruction[0] == 'flatten'
    orig_shape = obs.shape
    target_shape = instruction[1]
    if len(orig_shape) == len(target_shape):
        # torch.flatten(obs, start_dim=0, end_dim=-1) -> 1-D
        return obs.reshape(-1)
    else:
        # torch.flatten(obs, start_dim=-len(target_shape), end_dim=-1)
        lead = orig_shape[:len(orig_shape) - len(target_shape)]
        return obs.reshape(tuple(int(d) for d in lead) + (-1,))


def _collect_leaves(obs, instruction):
    """Flattened leaves in concat order. Nested cat(dim=-1) of cat(dim=-1)
    results is equivalent to one flat cat, so the tree is flattened."""
    if instruction == 'same' or instruction[0] == 'flatten':
        return [_flatten_leaf(obs, instruction)]
    elif instruction[0] == 'tuple':
        parts = []
        for o, inst in zip(obs, instruction[1]):
            parts.extend(_collect_leaves(o, inst))
        return parts
    elif instruction[0] == 'dict':
        parts = []
        for key in instruction[1].keys():
            parts.extend(_collect_leaves(obs[key], instruction[1][key]))
        return parts
    else:
        raise ValueError(f"unknown instruction {instruction!r}")


def _coalesce_narrow(parts, lane=_LANE):
    """Merge maximal runs of adjacent sub-128-lane leaves in plain JAX (tiny),
    preserving order, so the kernel never issues a masked store per tiny leaf."""
    out, run = [], []
    for p in parts:
        if int(p.shape[-1]) < lane:
            run.append(p)
        else:
            if run:
                out.append(run[0] if len(run) == 1 else jnp.concatenate(run, axis=-1))
                run = []
            out.append(p)
    if run:
        out.append(run[0] if len(run) == 1 else jnp.concatenate(run, axis=-1))
    return out


def flatten_module_forward(obs, instruction):
    if instruction == 'same':
        return obs
    parts = _collect_leaves(obs, instruction)

    if len(parts) == 1:
        # Pure reshape; nothing to concatenate — bypass the kernel (no HBM round-trip).
        return parts[0]

    ndims = {p.ndim for p in parts}
    if len(ndims) != 1:
        raise ValueError(f"torch.cat(dim=-1) requires equal ranks, got ndims {sorted(ndims)}")
    nd = ndims.pop()

    # torch.cat promotes / requires a common dtype: promote explicitly here.
    dtype = jnp.result_type(*parts)
    parts = [p.astype(dtype) for p in parts]

    if nd == 1:
        # Batchless scalar/vector obs: a (1, N) kernel tile wastes 7/8 sublanes
        # and cannot amortize the per-step pallas overhead — plain JAX.
        return jnp.concatenate(parts, axis=-1)

    # Collapse leading dims to a single batch dim (concat is along the last dim).
    lead = tuple(int(d) for d in parts[0].shape[:-1])
    for p in parts:
        if tuple(int(d) for d in p.shape[:-1]) != lead:
            raise ValueError(
                f"leading dims must match for cat(dim=-1): {p.shape[:-1]} vs {lead}")
    B = 1
    for d in lead:
        B *= d
    parts2d = [p.reshape(B, int(p.shape[-1])) for p in parts]

    # Coalesce adjacent narrow leaves (lane-density of the output stores).
    parts2d = _coalesce_narrow(parts2d)

    if len(parts2d) == 1:
        out2d = parts2d[0]                       # everything merged already
    else:
        out2d = pallas_concat_last_dim(parts2d)

    return out2d.reshape(lead + (int(out2d.shape[-1]),))


# ---------------------------------------------------------------------------
# Demo / self-test
# ---------------------------------------------------------------------------
if __name__ == "__main__":
    key = jax.random.PRNGKey(0)
    k1, k2, k3, k4, k5, k6 = jax.random.split(key, 6)

    # --- 1) dict obs: flatten NCHW image + keep vector, cat(dim=-1) ----------
    B, C, H, W, D = 2, 4, 16, 16, 32
    image = jax.random.normal(k1, (B, C, H, W), dtype=jnp.float32)
    vector = jax.random.normal(k2, (B, D), dtype=jnp.float32)
    obs = {'image': image, 'vector': vector}
    instruction = ('dict', {'image': ('flatten', (C, H, W)), 'vector': 'same'})

    out = jax.block_until_ready(flatten_module_forward(obs, instruction))
    ref = jnp.concatenate([image.reshape(B, -1), vector], axis=-1)
    assert out.shape == (B, C * H * W + D), out.shape
    assert out.dtype == ref.dtype
    assert jnp.allclose(out, ref), "mismatch vs reference concat (dict obs)"

    # --- 2) multi-tile grid path: force batch_tile < B -----------------------
    B2 = 32
    xa = jax.random.normal(k3, (B2, 256), dtype=jnp.float32)
    xb = jax.random.normal(k4, (B2, 128), dtype=jnp.float32)
    out2 = jax.block_until_ready(pallas_concat_last_dim([xa, xb], batch_tile=8))
    ref2 = jnp.concatenate([xa, xb], axis=-1)
    assert out2.shape == (B2, 384)
    assert jnp.allclose(out2, ref2), "mismatch vs reference concat (tiled grid)"

    # --- 3) tuple obs with extra leading dim + narrow-leaf coalescing --------
    a = jax.random.normal(k5, (2, 3, 8, 4), dtype=jnp.float32)
    b = jax.random.normal(k6, (2, 3, 16), dtype=jnp.float32)
    obs_t = (a, b)
    instruction_t = ('tuple', [('flatten', (8, 4)), 'same'])
    out3 = jax.block_until_ready(flatten_module_forward(obs_t, instruction_t))
    ref3 = jnp.concatenate([a.reshape(2, 3, -1), b], axis=-1)
    assert out3.shape == (2, 3, 48)
    assert jnp.allclose(out3, ref3), "mismatch vs reference concat (tuple obs)"

    print("KERNEL_OK")
</pallas_src>

<mosaic_0001>
module attributes {stable_mosaic.version = 11 : i64} {
  func.func @_concat_last_dim_kernel(%arg0: i32, %arg1: memref<2x1024xf32, #tpu.memory_space<vmem>>, %arg2: memref<2x32xf32, #tpu.memory_space<vmem>>, %arg3: memref<2x1056xf32, #tpu.memory_space<vmem>>) attributes {dimension_semantics = [#tpu.dimension_semantics<parallel>], iteration_bounds = array<i64: 1>, scalar_prefetch = 0 : i64, scratch_operands = 0 : i64, tpu.core_type = #tpu.core_type<tc>, window_params = [{transform_indices = @transform_0, window_bounds = array<i64: 2, 1024>}, {transform_indices = @transform_1, window_bounds = array<i64: 2, 32>}, {transform_indices = @transform_2, window_bounds = array<i64: 2, 1056>}]} {
    %c0 = arith.constant 0 : index
    %c0_0 = arith.constant 0 : index
    %0 = vector.load %arg1[%c0, %c0_0] : memref<2x1024xf32, #tpu.memory_space<vmem>>, vector<2x1024xf32>
    %c0_1 = arith.constant 0 : index
    %c0_2 = arith.constant 0 : index
    %1 = vector.load %arg3[%c0_1, %c0_2] : memref<2x1056xf32, #tpu.memory_space<vmem>>, vector<2x1024xf32>
    tpu.vector_store %arg3[%c0_1, %c0_2], %0 {strides = array<i32>} : memref<2x1056xf32, #tpu.memory_space<vmem>>, vector<2x1024xf32>,
    %c0_3 = arith.constant 0 : index
    %c0_4 = arith.constant 0 : index
    %2 = vector.load %arg2[%c0_3, %c0_4] : memref<2x32xf32, #tpu.memory_space<vmem>>, vector<2x32xf32>
    %c0_5 = arith.constant 0 : index
    %c1024 = arith.constant 1024 : index
    %3 = vector.load %arg3[%c0_5, %c1024] : memref<2x1056xf32, #tpu.memory_space<vmem>>, vector<2x32xf32>
    tpu.vector_store %arg3[%c0_5, %c1024], %2 {strides = array<i32>} : memref<2x1056xf32, #tpu.memory_space<vmem>>, vector<2x32xf32>,
    return
  }
  func.func @transform_0(%arg0: i32) -> (i32, i32) {
    %c0_i32 = arith.constant 0 : i32
    %c0_i32_0 = arith.constant 0 : i32
    return %arg0, %c0_i32 : i32, i32
  }
  func.func @transform_1(%arg0: i32) -> (i32, i32) {
    %c0_i32 = arith.constant 0 : i32
    %c0_i32_0 = arith.constant 0 : i32
    return %arg0, %c0_i32 : i32, i32
  }
  func.func @transform_2(%arg0: i32) -> (i32, i32) {
    %c0_i32 = arith.constant 0 : i32
    %c0_i32_0 = arith.constant 0 : i32
    return %arg0, %c0_i32 : i32, i32
  }
}

</mosaic_0001>

<bundles_post_ra>
// kernel: tpu_custom_call.1
= control target key start
LH: loop header
LB: loop body
LE: loop exit
PB: predicated region body
PF: predicated region fallthrough
CT: control target
= control target key end

     0   :  { %7 = vsyncpa [#allocation3], 0  ;;  %s173_s0 = inlined_call_operand.hbm [shape: f32[2,1024], index: 0, kind: input, shape index: {}]   ;;  %s174_s1 = inlined_call_operand.hbm [shape: f32[2,32], index: 1, kind: input, shape index: {}]   ;;  %s175_s2 = inlined_call_operand.hbm [shape: f32[2,1056], index: 2, kind: output, shape index: {}]  }
   0x1   :  { %8 = vsyncpa [#allocation6], 0 }
   0x2   :  { %9 = vsyncpa [#allocation4], 0  ;;  %s15_s11 = sshll.u32 %s173_s0, 4  ;;  %s146_s12 = smov [#allocation2]   ;;  %s16_s11 = int_to_ptr.hbm [resolvable:$true] %s15_s11 }
   0x3   :  { %s17_s13 = sshll.u32 %s146_s12, 4  ;;  %s26_s16 = sshll.u32 %s174_s1, 4  ;;  %s18_s13 = int_to_ptr.vmem [resolvable:$true] %s17_s13  ;;  %s27_s16 = int_to_ptr.hbm [resolvable:$true] %s26_s16 }
   0x4   :  { %20 = dma.hbm_to_vmem [thread:$0]  %s16_s11, 256, %s18_s13, [#allocation3]  }
   0x5   :  { %s147_s17 = smov [#allocation5]  }
   0x6   :  { %s28_s18 = sshll.u32 %s147_s17, 4  ;;  %s29_s18 = int_to_ptr.vmem [resolvable:$true] %s28_s18 }
   0x7   :  { %31 = dma.hbm_to_vmem [thread:$0]  %s27_s16, 32, %s29_s18, [#allocation6]  }
   0x8   :  { %140 = dma.done.wait [#allocation3], 256  }
   0x9   :  { %141 = vsyncadd [#allocation3], 4294967040 }
   0xa   :  { %142 = dma.done.wait [#allocation6], 32  }
   0xb   :  { %143 = vsyncadd [#allocation6], 4294967264  ;;  %s148_s19 = smov [#allocation7]   ;;  %s54_s22 = sshll.u32 %s175_s2, 4  ;;  %v40_v0 = vld [vmem:[#allocation2] sm:$0xff]  ;;  %v41_v1 = vld [vmem:[#allocation2 + $0x8] sm:$0xff]  ;;  %s55_s22 = int_to_ptr.hbm [resolvable:$true] %s54_s22 }
   0xc   :  { %s52_s0 = sshll.u32 %s148_s19, 4  ;;  %v44_v2 = vld [vmem:[#allocation5] sm:$0x3]  ;;  %vm45_vm0 = vcmask 254976   ;;  %42 = vst [vmem:[#allocation7] sm:$0xff] %v40_v0  ;;  %s53_s0 = int_to_ptr.vmem [resolvable:$true] %s52_s0 }
   0xd   :  { %43 = vst [vmem:[#allocation7 + $0x8] sm:$0xff] %v41_v1 }
   0xe   :  { %46 = vst.msk [vmem:[#allocation7 + $0x10] sm:$0x3] %vm45_vm0, %v44_v2 }
   0xf   :  { %57 = dma.vmem_to_hbm [thread:$0]  %s53_s0, 288, %s55_s22, [#allocation4]  }
  0x10   :  { %144 = dma.done.wait [#allocation4], 288  }
  0x11   :  { %145 = vsyncadd [#allocation4], 4294967008 }
  0x12   :  { %62 = vsyncpa [#allocation3], 1 }
  0x13   :  { %63 = vsyncpa [#allocation6], 1 }
  0x14   :  { %64 = vsyncpa [#allocation4], 1 }

</bundles_post_ra>
